<compile_context>
chip_gen: v7x
topology: tpu7x:2x2x1
jax: 0.10.0
libtpu: 0.0.40
codegen_flags: <defaults>
</compile_context>

<pallas_src>
import functools
import math

import jax
import jax.numpy as jnp
from jax.experimental import pallas as pl
from jax.experimental.pallas import tpu as pltpu

LOG_2PI = 1.8378770664093453  # log(2*pi)
LANE = 128


def _round_up(n, m):
    return (n + m - 1) // m * m


# --------------------------------------------------------------------------- #
# Kernel
# --------------------------------------------------------------------------- #
def actor_critic_kernel(x_ref, a_ref, eps_ref, w1_ref, w2_ref, w3_ref,
                        bias12_ref, aux_ref, out_ref, *, action_dim):
    """Fused GaussianPolicy + value-function forward for one batch tile.

    Packed weight layout (built by pack_params):
      w1p:    (IN,     HID1_W) bf16  [:, :h1]=policy W1, [:, h1:2h1]=value W1, rest 0
      w2p:    (HID1_W, HID2_W) bf16  block-diagonal (policy | value), rest 0
      w3p:    (HID2_W, OUT_W)  bf16  policy head -> lanes [0:A], value head -> lane A+2
      bias12: (2, max(HID1_W, HID2_W)) f32  rows = [b1 packed, b2 packed]
      aux:    (4, OUT_W) f32  rows = [b3 packed, std, inv_std, logp_const@lane0]

    Output layout (narrow, OUT_W = round_up(A+3, 8)):
      [:, 0:A] = pi,  [:, A] = logp(a),  [:, A+1] = logp(pi),  [:, A+2] = v, rest 0
    """
    A = action_dim
    hid1_w = w1_ref.shape[1]
    hid2_w = w2_ref.shape[1]
    out_w = out_ref.shape[1]
    tb = x_ref.shape[0]

    b1 = bias12_ref[0:1, :hid1_w]
    b2 = bias12_ref[1:2, :hid2_w]
    b3 = aux_ref[0:1, :]                     # (1, OUT_W)
    std_a = aux_ref[1:2, :A]                 # (1, A), precomputed exp(log_std)
    inv_std_a = aux_ref[2:3, :A]             # (1, A), precomputed exp(-log_std)
    logp_const = aux_ref[3:4, 0:1]           # (1, 1): -sum(log_std) - 0.5*A*log(2pi)

    # Fused (policy || value) MLP: bf16 MXU operands, f32 accumulation,
    # elementwise math in f32.
    x = x_ref[...]
    h = jnp.tanh(jnp.dot(x.astype(jnp.bfloat16), w1_ref[...],
                         preferred_element_type=jnp.float32) + b1)
    h = jnp.tanh(jnp.dot(h.astype(jnp.bfloat16), w2_ref[...],
                         preferred_element_type=jnp.float32) + b2)
    head = jnp.dot(h.astype(jnp.bfloat16), w3_ref[...],
                   preferred_element_type=jnp.float32) + b3
    # head lanes: [0:A] = mu, lane A+2 = v, everything else exactly 0.

    mu = head[:, :A]                         # (tb, A)
    eps = eps_ref[...]                       # (tb, A), native width, no padding
    a = a_ref[...]                           # (tb, A)

    pi = mu + std_a * eps                    # sample
    z_a = (a - mu) * inv_std_a
    # (pi - mu)/std == eps exactly, so logp_pi uses eps directly.
    logp_a = logp_const - 0.5 * jnp.sum(z_a * z_a, axis=-1, keepdims=True)
    logp_pi = logp_const - 0.5 * jnp.sum(eps * eps, axis=-1, keepdims=True)

    # Narrow overwriting stores (masked vst: VMEM-codegen cost only; HBM bytes
    # are what matter, and the output is now only OUT_W lanes wide).
    out_ref[:, :A] = pi
    out_ref[:, A:A + 1] = logp_a
    out_ref[:, A + 1:A + 2] = logp_pi
    out_ref[:, A + 2:A + 3] = head[:, A + 2:A + 3]
    if out_w > A + 3:
        out_ref[:, A + 3:] = jnp.zeros((tb, out_w - (A + 3)), jnp.float32)


# --------------------------------------------------------------------------- #
# Wrapper
# --------------------------------------------------------------------------- #
def actor_critic_forward(x, a, eps, packed_params, *, action_dim, tile_b=512):
    """x: (B, in_features) f32 or bf16, a: (B, A) f32, eps: (B, A) f32 N(0,1)."""
    B, in_features = x.shape
    A = action_dim
    w1p = packed_params["w1p"]
    w2p = packed_params["w2p"]
    w3p = packed_params["w3p"]
    bias12 = packed_params["bias12"]
    aux = packed_params["aux"]
    out_w = w3p.shape[1]

    # Batch tile: multiple of 8 sublanes, at most ceil(B/2) so the grid keeps
    # >= 2 steps when possible (both v7x TensorCores get work), up to 512 rows.
    tb = min(tile_b, max(8, _round_up(-(-B // 2), 8)))
    num_tiles = pl.cdiv(B, tb)   # no batch padding: Pallas masks the ragged block

    kernel = functools.partial(actor_critic_kernel, action_dim=A)

    packed = pl.pallas_call(
        kernel,
        out_shape=jax.ShapeDtypeStruct((B, out_w), jnp.float32),
        grid_spec=pltpu.PrefetchScalarGridSpec(
            num_scalar_prefetch=0,
            grid=(num_tiles,),
            in_specs=[
                pl.BlockSpec((tb, in_features), lambda i: (i, 0)),  # x
                pl.BlockSpec((tb, A), lambda i: (i, 0)),            # a (native width)
                pl.BlockSpec((tb, A), lambda i: (i, 0)),            # eps (native width)
                pl.BlockSpec(w1p.shape, lambda i: (0, 0)),          # weights resident
                pl.BlockSpec(w2p.shape, lambda i: (0, 0)),
                pl.BlockSpec(w3p.shape, lambda i: (0, 0)),
                pl.BlockSpec(bias12.shape, lambda i: (0, 0)),
                pl.BlockSpec(aux.shape, lambda i: (0, 0)),
            ],
            out_specs=pl.BlockSpec((tb, out_w), lambda i: (i, 0)),
        ),
        compiler_params=pltpu.CompilerParams(
            dimension_semantics=("parallel",)),
    )(x, a, eps, w1p, w2p, w3p, bias12, aux)

    pi = packed[:, :A]
    logp = packed[:, A]
    logp_pi = packed[:, A + 1]
    v = packed[:, A + 2]
    return pi, logp, logp_pi, v


# --------------------------------------------------------------------------- #
# Parameters (mirrors the PyTorch module's init: uniform weights, zero biases,
# log_std = -0.5 * ones) and packing into the fused layout.
# --------------------------------------------------------------------------- #
def init_raw_params(key, in_features, hidden_sizes, action_dim):
    assert len(hidden_sizes) == 2, "fused kernel is written for 2 hidden layers"
    h1, h2 = hidden_sizes

    def linear(key, fan_in, fan_out):
        bound = 1.0 / math.sqrt(fan_in)
        w = jax.random.uniform(key, (fan_in, fan_out), jnp.float32, -bound, bound)
        b = jnp.zeros((1, fan_out), jnp.float32)   # nn.init.zeros_(bias)
        return w, b

    keys = jax.random.split(key, 6)
    raw = {}
    raw["w1"], raw["b1"] = linear(keys[0], in_features, h1)
    raw["w2"], raw["b2"] = linear(keys[1], h1, h2)
    raw["w3"], raw["b3"] = linear(keys[2], h2, action_dim)
    raw["vw1"], raw["vb1"] = linear(keys[3], in_features, h1)
    raw["vw2"], raw["vb2"] = linear(keys[4], h1, h2)
    raw["vw3"], raw["vb3"] = linear(keys[5], h2, 1)
    raw["log_std"] = jnp.full((1, action_dim), -0.5, jnp.float32)
    return raw


def pack_params(raw, in_features, hidden_sizes, action_dim):
    h1, h2 = hidden_sizes
    A = action_dim
    hid1_w = _round_up(2 * h1, LANE)
    hid2_w = _round_up(2 * h2, LANE)
    out_w = _round_up(A + 3, 8)          # narrow output: pi | logp | logp_pi | v
    bias_w = max(hid1_w, hid2_w)

    w1p = jnp.zeros((in_features, hid1_w), jnp.float32)
    w1p = w1p.at[:, :h1].set(raw["w1"]).at[:, h1:2 * h1].set(raw["vw1"])

    w2p = jnp.zeros((hid1_w, hid2_w), jnp.float32)
    w2p = w2p.at[:h1, :h2].set(raw["w2"]).at[h1:2 * h1, h2:2 * h2].set(raw["vw2"])

    w3p = jnp.zeros((hid2_w, out_w), jnp.float32)
    w3p = w3p.at[:h2, :A].set(raw["w3"]).at[h2:2 * h2, A + 2:A + 3].set(raw["vw3"])

    bias12 = jnp.zeros((2, bias_w), jnp.float32)
    bias12 = bias12.at[0, :h1].set(raw["b1"][0]).at[0, h1:2 * h1].set(raw["vb1"][0])
    bias12 = bias12.at[1, :h2].set(raw["b2"][0]).at[1, h2:2 * h2].set(raw["vb2"][0])

    log_std = raw["log_std"][0]
    logp_const = -jnp.sum(log_std) - 0.5 * A * LOG_2PI  # grid-invariant, precomputed
    aux = jnp.zeros((4, out_w), jnp.float32)
    aux = aux.at[0, :A].set(raw["b3"][0]).at[0, A + 2].set(raw["vb3"][0, 0])
    aux = aux.at[1, :A].set(jnp.exp(log_std))            # std
    aux = aux.at[2, :A].set(jnp.exp(-log_std))           # 1/std
    aux = aux.at[3, 0].set(logp_const)

    return {
        "w1p": w1p.astype(jnp.bfloat16),
        "w2p": w2p.astype(jnp.bfloat16),
        "w3p": w3p.astype(jnp.bfloat16),
        "bias12": bias12,
        "aux": aux,
    }


# --------------------------------------------------------------------------- #
# Pure-JAX reference (unfused, same bf16-matmul / f32-accumulate numerics)
# --------------------------------------------------------------------------- #
def _bf16_linear(h, w, b):
    return jnp.dot(h.astype(jnp.bfloat16), w.astype(jnp.bfloat16),
                   preferred_element_type=jnp.float32) + b


def reference_forward(x, a, eps, raw):
    h = jnp.tanh(_bf16_linear(x, raw["w1"], raw["b1"]))
    h = jnp.tanh(_bf16_linear(h, raw["w2"], raw["b2"]))
    mu = _bf16_linear(h, raw["w3"], raw["b3"])

    hv = jnp.tanh(_bf16_linear(x, raw["vw1"], raw["vb1"]))
    hv = jnp.tanh(_bf16_linear(hv, raw["vw2"], raw["vb2"]))
    v = _bf16_linear(hv, raw["vw3"], raw["vb3"])[:, 0]

    log_std = raw["log_std"]
    std = jnp.exp(log_std)
    pi = mu + std * eps

    def lp(val):
        z = (val - mu) / std
        return jnp.sum(-0.5 * z * z - log_std - 0.5 * LOG_2PI, axis=-1)

    return pi, lp(a), lp(pi), v


# --------------------------------------------------------------------------- #
if __name__ == "__main__":
    B, IN_FEATURES, HIDDEN, ACTION_DIM = 8, 16, (64, 64), 4

    key = jax.random.PRNGKey(0)
    k_param, k_x, k_a, k_eps = jax.random.split(key, 4)

    raw = init_raw_params(k_param, IN_FEATURES, HIDDEN, ACTION_DIM)
    params = pack_params(raw, IN_FEATURES, HIDDEN, ACTION_DIM)

    x = jax.random.normal(k_x, (B, IN_FEATURES), jnp.float32)
    a = jax.random.normal(k_a, (B, ACTION_DIM), jnp.float32)
    eps = jax.random.normal(k_eps, (B, ACTION_DIM), jnp.float32)  # policy.sample() noise

    pi, logp, logp_pi, v = actor_critic_forward(x, a, eps, params,
                                                action_dim=ACTION_DIM)
    jax.block_until_ready((pi, logp, logp_pi, v))

    assert pi.shape == (B, ACTION_DIM)
    assert logp.shape == (B,)
    assert logp_pi.shape == (B,)
    assert v.shape == (B,)

    # Sanity-check against an unfused pure-JAX reference using the same
    # bf16-operand / f32-accumulate matmul numerics.
    pi_r, logp_r, logp_pi_r, v_r = reference_forward(x, a, eps, raw)
    assert jnp.allclose(pi, pi_r, atol=1e-2, rtol=1e-2), "pi mismatch"
    assert jnp.allclose(logp, logp_r, atol=1e-2, rtol=1e-2), "logp mismatch"
    assert jnp.allclose(logp_pi, logp_pi_r, atol=1e-2, rtol=1e-2), "logp_pi mismatch"
    assert jnp.allclose(v, v_r, atol=1e-2, rtol=1e-2), "v mismatch"

    # TODO(synk): Categorical (Discrete action space) policy branch not implemented;
    # this implements the GaussianPolicy (Box) path of ActorCritic.
    print("KERNEL_OK")
</pallas_src>

<mosaic_0001>
module attributes {stable_mosaic.version = 11 : i64} {
  func.func @actor_critic_kernel(%arg0: i32, %arg1: memref<8x16xf32, #tpu.memory_space<vmem>>, %arg2: memref<8x4xf32, #tpu.memory_space<vmem>>, %arg3: memref<8x4xf32, #tpu.memory_space<vmem>>, %arg4: memref<16x128xbf16, #tpu.memory_space<vmem>>, %arg5: memref<128x128xbf16, #tpu.memory_space<vmem>>, %arg6: memref<128x8xbf16, #tpu.memory_space<vmem>>, %arg7: memref<2x128xf32, #tpu.memory_space<vmem>>, %arg8: memref<4x8xf32, #tpu.memory_space<vmem>>, %arg9: memref<8x8xf32, #tpu.memory_space<vmem>>) attributes {dimension_semantics = [#tpu.dimension_semantics<parallel>], iteration_bounds = array<i64: 1>, scalar_prefetch = 0 : i64, scratch_operands = 0 : i64, tpu.core_type = #tpu.core_type<tc>, window_params = [{transform_indices = @transform_0, window_bounds = array<i64: 8, 16>}, {transform_indices = @transform_1, window_bounds = array<i64: 8, 4>}, {transform_indices = @transform_2, window_bounds = array<i64: 8, 4>}, {pipeline_mode = #tpu.pipeline_mode<synchronous>, transform_indices = @transform_3, window_bounds = array<i64: 16, 128>}, {pipeline_mode = #tpu.pipeline_mode<synchronous>, transform_indices = @transform_4, window_bounds = array<i64: 128, 128>}, {pipeline_mode = #tpu.pipeline_mode<synchronous>, transform_indices = @transform_5, window_bounds = array<i64: 128, 8>}, {pipeline_mode = #tpu.pipeline_mode<synchronous>, transform_indices = @transform_6, window_bounds = array<i64: 2, 128>}, {pipeline_mode = #tpu.pipeline_mode<synchronous>, transform_indices = @transform_7, window_bounds = array<i64: 4, 8>}, {transform_indices = @transform_8, window_bounds = array<i64: 8, 8>}]} {
    %c0 = arith.constant 0 : index
    %c0_0 = arith.constant 0 : index
    %0 = vector.load %arg7[%c0, %c0_0] : memref<2x128xf32, #tpu.memory_space<vmem>>, vector<1x128xf32>
    %c1 = arith.constant 1 : index
    %c0_1 = arith.constant 0 : index
    %1 = vector.load %arg7[%c1, %c0_1] : memref<2x128xf32, #tpu.memory_space<vmem>>, vector<1x128xf32>
    %c0_2 = arith.constant 0 : index
    %c0_3 = arith.constant 0 : index
    %2 = vector.load %arg8[%c0_2, %c0_3] : memref<4x8xf32, #tpu.memory_space<vmem>>, vector<1x8xf32>
    %c1_4 = arith.constant 1 : index
    %c0_5 = arith.constant 0 : index
    %3 = vector.load %arg8[%c1_4, %c0_5] : memref<4x8xf32, #tpu.memory_space<vmem>>, vector<1x4xf32>
    %c2 = arith.constant 2 : index
    %c0_6 = arith.constant 0 : index
    %4 = vector.load %arg8[%c2, %c0_6] : memref<4x8xf32, #tpu.memory_space<vmem>>, vector<1x4xf32>
    %c3 = arith.constant 3 : index
    %c0_7 = arith.constant 0 : index
    %5 = vector.load %arg8[%c3, %c0_7] : memref<4x8xf32, #tpu.memory_space<vmem>>, vector<1x1xf32>
    %c0_8 = arith.constant 0 : index
    %c0_9 = arith.constant 0 : index
    %6 = vector.load %arg1[%c0_8, %c0_9] : memref<8x16xf32, #tpu.memory_space<vmem>>, vector<8x16xf32>
    %7 = arith.truncf %6 : vector<8x16xf32> to vector<8x16xbf16>
    %c0_10 = arith.constant 0 : index
    %c0_11 = arith.constant 0 : index
    %8 = vector.load %arg4[%c0_10, %c0_11] : memref<16x128xbf16, #tpu.memory_space<vmem>>, vector<16x128xbf16>
    %cst = arith.constant dense<0.000000e+00> : vector<8x128xf32>
    %9 = tpu.matmul %7, %8, %cst {dimension_numbers = #tpu.dot_dimension_numbers<[1], [0], [0], [1], [0, 0, 1, 1], [], []>} : vector<8x16xbf16>, vector<16x128xbf16>, vector<8x128xf32> -> vector<8x128xf32>
    %10 = vector.broadcast %0 : vector<1x128xf32> to vector<8x128xf32>
    %11 = arith.addf %9, %10 : vector<8x128xf32>
    %12 = math.tanh %11 : vector<8x128xf32>
    %13 = arith.truncf %12 : vector<8x128xf32> to vector<8x128xbf16>
    %c0_12 = arith.constant 0 : index
    %c0_13 = arith.constant 0 : index
    %14 = vector.load %arg5[%c0_12, %c0_13] : memref<128x128xbf16, #tpu.memory_space<vmem>>, vector<128x128xbf16>
    %cst_14 = arith.constant dense<0.000000e+00> : vector<8x128xf32>
    %15 = tpu.matmul %13, %14, %cst_14 {dimension_numbers = #tpu.dot_dimension_numbers<[1], [0], [0], [1], [0, 0, 1, 1], [], []>} : vector<8x128xbf16>, vector<128x128xbf16>, vector<8x128xf32> -> vector<8x128xf32>
    %16 = vector.broadcast %1 : vector<1x128xf32> to vector<8x128xf32>
    %17 = arith.addf %15, %16 : vector<8x128xf32>
    %18 = math.tanh %17 : vector<8x128xf32>
    %19 = arith.truncf %18 : vector<8x128xf32> to vector<8x128xbf16>
    %c0_15 = arith.constant 0 : index
    %c0_16 = arith.constant 0 : index
    %20 = vector.load %arg6[%c0_15, %c0_16] : memref<128x8xbf16, #tpu.memory_space<vmem>>, vector<128x8xbf16>
    %cst_17 = arith.constant dense<0.000000e+00> : vector<8x8xf32>
    %21 = tpu.matmul %19, %20, %cst_17 {dimension_numbers = #tpu.dot_dimension_numbers<[1], [0], [0], [1], [0, 0, 1, 1], [], []>} : vector<8x128xbf16>, vector<128x8xbf16>, vector<8x8xf32> -> vector<8x8xf32>
    %22 = vector.broadcast %2 : vector<1x8xf32> to vector<8x8xf32>
    %23 = arith.addf %21, %22 : vector<8x8xf32>
    %24 = vector.extract_strided_slice %23 {offsets = [0, 0], sizes = [8, 4], strides = [1, 1]} : vector<8x8xf32> to vector<8x4xf32>
    %c0_18 = arith.constant 0 : index
    %c0_19 = arith.constant 0 : index
    %25 = vector.load %arg3[%c0_18, %c0_19] : memref<8x4xf32, #tpu.memory_space<vmem>>, vector<8x4xf32>
    %c0_20 = arith.constant 0 : index
    %c0_21 = arith.constant 0 : index
    %26 = vector.load %arg2[%c0_20, %c0_21] : memref<8x4xf32, #tpu.memory_space<vmem>>, vector<8x4xf32>
    %27 = vector.broadcast %3 : vector<1x4xf32> to vector<8x4xf32>
    %28 = arith.mulf %27, %25 : vector<8x4xf32>
    %29 = arith.addf %24, %28 : vector<8x4xf32>
    %30 = arith.subf %26, %24 : vector<8x4xf32>
    %31 = vector.broadcast %4 : vector<1x4xf32> to vector<8x4xf32>
    %32 = arith.mulf %30, %31 : vector<8x4xf32>
    %33 = arith.mulf %32, %32 : vector<8x4xf32>
    %cst_22 = arith.constant dense<0.000000e+00> : vector<8xf32>
    %34 = vector.multi_reduction <add>, %33, %cst_22 [1] : vector<8x4xf32> to vector<8xf32>
    %35 = vector.shape_cast %34 : vector<8xf32> to vector<8x1xf32>
    %cst_23 = arith.constant 5.000000e-01 : f32
    %36 = vector.broadcast %cst_23 : f32 to vector<8x1xf32>
    %37 = arith.mulf %36, %35 : vector<8x1xf32>
    %38 = vector.broadcast %5 : vector<1x1xf32> to vector<8x1xf32>
    %39 = arith.subf %38, %37 : vector<8x1xf32>
    %40 = arith.mulf %25, %25 : vector<8x4xf32>
    %cst_24 = arith.constant dense<0.000000e+00> : vector<8xf32>
    %41 = vector.multi_reduction <add>, %40, %cst_24 [1] : vector<8x4xf32> to vector<8xf32>
    %42 = vector.shape_cast %41 : vector<8xf32> to vector<8x1xf32>
    %cst_25 = arith.constant 5.000000e-01 : f32
    %43 = vector.broadcast %cst_25 : f32 to vector<8x1xf32>
    %44 = arith.mulf %43, %42 : vector<8x1xf32>
    %45 = vector.broadcast %5 : vector<1x1xf32> to vector<8x1xf32>
    %46 = arith.subf %45, %44 : vector<8x1xf32>
    %c0_26 = arith.constant 0 : index
    %c0_27 = arith.constant 0 : index
    %47 = vector.load %arg9[%c0_26, %c0_27] : memref<8x8xf32, #tpu.memory_space<vmem>>, vector<8x4xf32>
    tpu.vector_store %arg9[%c0_26, %c0_27], %29 {strides = array<i32>} : memref<8x8xf32, #tpu.memory_space<vmem>>, vector<8x4xf32>,
    %c0_28 = arith.constant 0 : index
    %c4 = arith.constant 4 : index
    %48 = vector.load %arg9[%c0_28, %c4] : memref<8x8xf32, #tpu.memory_space<vmem>>, vector<8x1xf32>
    tpu.vector_store %arg9[%c0_28, %c4], %39 {strides = array<i32>} : memref<8x8xf32, #tpu.memory_space<vmem>>, vector<8x1xf32>,
    %c0_29 = arith.constant 0 : index
    %c5 = arith.constant 5 : index
    %49 = vector.load %arg9[%c0_29, %c5] : memref<8x8xf32, #tpu.memory_space<vmem>>, vector<8x1xf32>
    tpu.vector_store %arg9[%c0_29, %c5], %46 {strides = array<i32>} : memref<8x8xf32, #tpu.memory_space<vmem>>, vector<8x1xf32>,
    %50 = vector.extract_strided_slice %23 {offsets = [0, 6], sizes = [8, 1], strides = [1, 1]} : vector<8x8xf32> to vector<8x1xf32>
    %c0_30 = arith.constant 0 : index
    %c6 = arith.constant 6 : index
    %51 = vector.load %arg9[%c0_30, %c6] : memref<8x8xf32, #tpu.memory_space<vmem>>, vector<8x1xf32>
    tpu.vector_store %arg9[%c0_30, %c6], %50 {strides = array<i32>} : memref<8x8xf32, #tpu.memory_space<vmem>>, vector<8x1xf32>,
    %cst_31 = arith.constant 0.000000e+00 : f32
    %52 = vector.broadcast %cst_31 : f32 to vector<8x1xf32>
    %c0_32 = arith.constant 0 : index
    %c7 = arith.constant 7 : index
    %53 = vector.load %arg9[%c0_32, %c7] : memref<8x8xf32, #tpu.memory_space<vmem>>, vector<8x1xf32>
    tpu.vector_store %arg9[%c0_32, %c7], %52 {strides = array<i32>} : memref<8x8xf32, #tpu.memory_space<vmem>>, vector<8x1xf32>,
    return
  }
  func.func @transform_0(%arg0: i32) -> (i32, i32) {
    %c0_i32 = arith.constant 0 : i32
    %c0_i32_0 = arith.constant 0 : i32
    return %arg0, %c0_i32 : i32, i32
  }
  func.func @transform_1(%arg0: i32) -> (i32, i32) {
    %c0_i32 = arith.constant 0 : i32
    %c0_i32_0 = arith.constant 0 : i32
    return %arg0, %c0_i32 : i32, i32
  }
  func.func @transform_2(%arg0: i32) -> (i32, i32) {
    %c0_i32 = arith.constant 0 : i32
    %c0_i32_0 = arith.constant 0 : i32
    return %arg0, %c0_i32 : i32, i32
  }
  func.func @transform_3(%arg0: i32) -> (i32, i32) {
    %c0_i32 = arith.constant 0 : i32
    %c0_i32_0 = arith.constant 0 : i32
    %c0_i32_1 = arith.constant 0 : i32
    return %c0_i32, %c0_i32_0 : i32, i32
  }
  func.func @transform_4(%arg0: i32) -> (i32, i32) {
    %c0_i32 = arith.constant 0 : i32
    %c0_i32_0 = arith.constant 0 : i32
    %c0_i32_1 = arith.constant 0 : i32
    return %c0_i32, %c0_i32_0 : i32, i32
  }
  func.func @transform_5(%arg0: i32) -> (i32, i32) {
    %c0_i32 = arith.constant 0 : i32
    %c0_i32_0 = arith.constant 0 : i32
    %c0_i32_1 = arith.constant 0 : i32
    return %c0_i32, %c0_i32_0 : i32, i32
  }
  func.func @transform_6(%arg0: i32) -> (i32, i32) {
    %c0_i32 = arith.constant 0 : i32
    %c0_i32_0 = arith.constant 0 : i32
    %c0_i32_1 = arith.constant 0 : i32
    return %c0_i32, %c0_i32_0 : i32, i32
  }
  func.func @transform_7(%arg0: i32) -> (i32, i32) {
    %c0_i32 = arith.constant 0 : i32
    %c0_i32_0 = arith.constant 0 : i32
    %c0_i32_1 = arith.constant 0 : i32
    return %c0_i32, %c0_i32_0 : i32, i32
  }
  func.func @transform_8(%arg0: i32) -> (i32, i32) {
    %c0_i32 = arith.constant 0 : i32
    %c0_i32_0 = arith.constant 0 : i32
    return %arg0, %c0_i32 : i32, i32
  }
}

</mosaic_0001>

<bundles_post_ra>
// kernel: tpu_custom_call.1
= control target key start
LH: loop header
LB: loop body
LE: loop exit
PB: predicated region body
PF: predicated region fallthrough
CT: control target
= control target key end

     0   :  { %v517_v1 = vmov 0.0   ;;  %vm51_vm0 = vcmask 130048   ;;  %vm518_vm1 = vmmov 0   ;;  %s678_s0 = inlined_call_operand.vmem [shape: f32[8,16], index: 0, kind: input, shape index: {}]   ;;  %s679_s1 = inlined_call_operand.vmem [shape: f32[8,4], index: 1, kind: input, shape index: {}]   ;;  %s680_s2 = inlined_call_operand.vmem [shape: f32[8,4], index: 2, kind: input, shape index: {}]   ;;  %s681_s3 = inlined_call_operand.vmem [shape: bf16[16,128], index: 3, kind: input, shape index: {}]   ;;  %s682_s4 = inlined_call_operand.vmem [shape: bf16[128,128], index: 4, kind: input, shape index: {}]   ;;  %s683_s5 = inlined_call_operand.vmem [shape: bf16[128,8], index: 5, kind: input, shape index: {}]   ;;  %s684_s6 = inlined_call_operand.vmem [shape: f32[2,128], index: 6, kind: input, shape index: {}]   ;;  %s685_s7 = inlined_call_operand.vmem [shape: f32[4,8], index: 7, kind: input, shape index: {}]   ;;  %s686_s8 = inlined_call_operand.hbm [shape: f32[8,8], index: 8, kind: output, shape index: {}]  }
   0x1   :  { %v472_v0 = vld [vmem:[%s681_s3] sm:$0xff]   ;;  %421 = vmatprep.subr.bf16.mxu0 %v517_v1  ;;  %427 = vmatprep.subr.bf16.mxu1 %v517_v1  ;;  %v474_v5 = vld [vmem:[%s682_s4 + $0x8] sm:$0xff]   ;;  %v475_v6 = vld [vmem:[%s682_s4 + $0x10] sm:$0xff]  }
   0x2   :  { %v37_v2 = vld [vmem:[%s678_s0] sm:$0xff]  ;;  %422 = vmatpush3.bf16.msra.mxu0 %v472_v0  ;;  %423 = vmatprep.mubr.msk.bf16.mxu0 %vm518_vm1, %v517_v1  ;;  %v476_v7 = vld [vmem:[%s682_s4 + $0x18] sm:$0xff]  }
   0x3   :  { %v473_v3 = vld [vmem:[%s682_s4] sm:$0xff]   ;;  %v38_v4 = vpack.c.bf16 %v37_v2, %v37_v2  ;;  %443 = vmatprep.mubr.msk.bf16.mxu1 %vm518_vm1, %v517_v1  ;;  %447 = vmatprep.subr.bf16.mxu0 %v517_v1 }
   0x4   :  { %428 = vmatpush3.bf16.msra.mxu1 %v473_v3 }
   0x5   :  { %429 = vmatprep.subr.bf16.mxu1 %v517_v1  ;;  %424 = vmatmul.mubr.msk.bf16.vlgmr.msra.gmra.mrb[0].mxu0 %vm51_vm0, %v38_v4 }
   0x6   :  { %463 = vmatprep.mubr.msk.bf16.mxu0 %vm518_vm1, %v517_v1 }
   0x8   :  { %430 = vmatpush3.bf16.msra.mxu1 %v474_v5 }
   0x9   :  { %431 = vmatprep.subr.bf16.mxu1 %v517_v1 }
   0xc   :  { %432 = vmatpush3.bf16.msra.mxu1 %v475_v6 }
   0xd   :  { %433 = vmatprep.subr.bf16.mxu1 %v517_v1 }
   0xe   :  { %13 = vsyncpa [#allocation3], 0  ;;  %v477_v8 = vld [vmem:[%s682_s4 + $0x20] sm:$0xff]   ;;  %v478_v9 = vld [vmem:[%s682_s4 + $0x28] sm:$0xff]   ;;  %vm330_vm2 = vcmask 31744   ;;  %s519_s26 = smov 4  }
   0xf   :  { %v479_v10 = vld [vmem:[%s682_s4 + $0x30] sm:$0xff]   ;;  %v480_v11 = vld [vmem:[%s682_s4 + $0x38] sm:$0xff]   ;;  %v481_v12 = vld [vmem:[%s683_s5] sm:$0xff]   ;;  %s520_s27 = smov 5   ;;  %vm351_vm3 = vcmask 39968   ;;  %vm357_vm4 = vcmask 48168  }
  0x10   :  { %434 = vmatpush3.bf16.msra.mxu1 %v476_v7  ;;  %448 = vmatpush3.bf16.msra.mxu0 %v481_v12  ;;  %v482_v13 = vld [vmem:[%s683_s5 + $0x8] sm:$0xff]   ;;  %v483_v14 = vld [vmem:[%s683_s5 + $0x10] sm:$0xff]   ;;  %v484_v15 = vld [vmem:[%s683_s5 + $0x18] sm:$0xff]   ;;  %s521_s28 = smov [#allocation2]   ;;  %vm359_vm5 = vcmask 56368   ;;  %vm361_vm6 = vcmask 64568  }
  0x11   :  { %435 = vmatprep.subr.bf16.mxu1 %v517_v1  ;;  %449 = vmatprep.subr.bf16.mxu0 %v517_v1  ;;  %v377_v16 = vld [vmem:[%s684_s6] ss:$0 sm:$0xff]  ;;  %v486_v25 = vld [vmem:[%s683_s5 + $0x28] sm:$0xff]   ;;  %v487_v26 = vld [vmem:[%s683_s5 + $0x30] sm:$0xff]   ;;  %s369_s4 = sshll.u32 %s521_s28, 4  ;;  %s370_s4 = int_to_ptr.vmem [resolvable:$true] %s369_s4 }
  0x12   :  { %v485_v24 = vld [vmem:[%s683_s5 + $0x20] sm:$0xff]   ;;  %v488_v27 = vld [vmem:[%s683_s5 + $0x38] sm:$0xff]   ;;  %p498_p1 = scmp.lt.s32.totalorder %s370_s4, %s370_s4 }
  0x13   :  { %v380_v28 = vld [vmem:[%s684_s6 + $0x1] ss:$0 sm:$0xff]  ;;  %v389_v38 = vld [vmem:[%s685_s7] ss:$0 sm:$0xff]  ;;  %v399_v45 = vld [vmem:[%s685_s7 + $0x2] ss:$0 sm:$0xff] }
  0x14   :  { %436 = vmatpush3.bf16.msra.mxu1 %v477_v8  ;;  %450 = vmatpush3.bf16.msra.mxu0 %v482_v13  ;;  %v398_v36 = vld [vmem:[%s685_s7 + $0x1] ss:$0 sm:$0xff]  ;;  %v400_v55 = vld [vmem:[%s685_s7 + $0x3] ss:$0 sm:$0xff]  ;;  %s493_s7 = scalar_lea.vmem %s370_s4, 128 }
  0x15   :  { %437 = vmatprep.subr.bf16.mxu1 %v517_v1  ;;  %451 = vmatprep.subr.bf16.mxu0 %v517_v1  ;;  %v315_v37 = vld [vmem:[%s680_s2] sm:$0xff]  ;;  %p494_p0 = scmp.ne.s32.totalorder %s370_s4, %s493_s7  ;;  %p499_p2 = scmp.lt.s32.totalorder %s493_s7, %s493_s7 }
  0x16   :  { %v321_v39 = vmul.f32 %v398_v36, %v315_v37  ;;  %v316_v41 = vld [vmem:[%s679_s1] sm:$0xff]  ;;  %v340_v51 = vmul.f32 %v315_v37, %v315_v37 }
  0x17   :  { %p500_p3 = por %p499_p2, %p498_p1 }
  0x18   :  { %438 = vmatpush3.bf16.msra.mxu1 %v478_v9  ;;  %452 = vmatpush3.bf16.msra.mxu0 %v483_v14  ;;  %v341_v53 = vsel %vm330_vm2, %v340_v51, 0.0 }
  0x19   :  { %439 = vmatprep.subr.bf16.mxu1 %v517_v1  ;;  %453 = vmatprep.subr.bf16.mxu0 %v517_v1  ;;  %p501_p4 = pnand %p500_p3, %p494_p0 }
  0x1c   :  { %440 = vmatpush3.bf16.msra.mxu1 %v479_v10  ;;  %454 = vmatpush3.bf16.msra.mxu0 %v484_v15 }
  0x1d   :  { %441 = vmatprep.subr.bf16.mxu1 %v517_v1  ;;  %455 = vmatprep.subr.bf16.mxu0 %v517_v1 }
  0x20   :  { %442 = vmatpush3.bf16.msra.mxu1 %v480_v11  ;;  %456 = vmatpush3.bf16.msra.mxu0 %v485_v24 }
  0x21   :  { %457 = vmatprep.subr.bf16.mxu0 %v517_v1 }
  0x24   :  { %458 = vmatpush3.bf16.msra.mxu0 %v486_v25 }
  0x25   :  { %459 = vmatprep.subr.bf16.mxu0 %v517_v1 }
  0x28   :  { %460 = vmatpush3.bf16.msra.mxu0 %v487_v26 }
  0x29   :  { %461 = vmatprep.subr.bf16.mxu0 %v517_v1 }
  0x2c   :  { %462 = vmatpush3.bf16.msra.mxu0 %v488_v27 }
  0xd8   :  { %v89_v17 = vpop.f32.mrb[0].mxu0 }
  0xd9   :  { %v90_v18 = vadd.f32 %v377_v16, %v89_v17  ;;  %v425_v19 = vpop.f32.mrb[1].mxu0 }
  0xda   :  { %v92_v20 = vpop.f32.mrb[2].mxu0 }
  0xdb   :  { %489 = vtanh.f32 %v90_v18  ;;  %v426_v21 = vpop.f32.mrb[3].mxu0 }
  0xe5   :  { %v490_v22 = vpop.eup %489 }
  0xe6   :  { %v96_v23 = vpack.c.bf16 %v490_v22, %v490_v22 }
  0xe8   :  { %444 = vmatmul.mubr.bf16.vlgmr.msra.gmra.mrb[0].mxu1 %v96_v23 }
 0x1bb   :  { %v199_v29 = vpop.f32.mrb[0].mxu1 }
 0x1bc   :  { %v200_v30 = vadd.f32 %v380_v28, %v199_v29  ;;  %v445_v31 = vpop.f32.mrb[1].mxu1 }
 0x1bd   :  { %v202_v32 = vpop.f32.mrb[2].mxu1 }
 0x1be   :  { %491 = vtanh.f32 %v200_v30  ;;  %v446_v33 = vpop.f32.mrb[3].mxu1 }
 0x1c8   :  { %v492_v34 = vpop.eup %491 }
 0x1c9   :  { %v206_v35 = vpack.c.bf16 %v492_v34, %v492_v34 }
 0x1cb   :  { %464 = vmatmul.mubr.bf16.vlgmr.msra.gmra.mrb[4].mxu0 %v206_v35 }
 0x29e   :  { %v309_v40 = vpop.f32.mrb[4].mxu0 }
 0x29f   :  { %v310_v42 = vadd.f32 %v389_v38, %v309_v40  ;;  %v465_v43 = vpop.f32.mrb[5].mxu0 }
 0x2a0   :  { %v312_v44 = vpop.f32.mrb[6].mxu0 }
 0x2a1   :  { %v466_v46 = vpop.f32.mrb[7].mxu0  ;;  %v323_v47 = vsub.f32 %v316_v41, %v310_v42  ;;  %v322_v48 = vadd.f32 %v321_v39, %v310_v42 }
 0x2a3   :  { %v328_v49 = vmul.f32 %v399_v45, %v323_v47  ;;  %346 = vst.msk [vmem:[#allocation2] sm:$0xff] %vm330_vm2, %v322_v48 }
 0x2a5   :  { %v329_v50 = vmul.f32 %v328_v49, %v328_v49 }
 0x2a7   :  { %v331_v52 = vsel %vm330_vm2, %v329_v50, 0.0 }
 0x2a8   :  { %332 = vadd.xlane.f32.xlu0 %v331_v52 }
 0x2ac   :  { %342 = vadd.xlane.f32.xlu0 %v341_v53 }
 0x335   :  { %v333_v54 = vpop.xlane.xlu0 %332 }
 0x336   :  { %v334_v56 = vmul.f32 0.5, %v333_v54 }
 0x338   :  { %v339_v57 = vsub.f32 %v400_v55, %v334_v56 }
 0x339   :  { %v343_v58 = vpop.xlane.xlu0 %342 }
 0x33a   :  { %v344_v59 = vmul.f32 0.5, %v343_v58  ;;  %348 = vrot.lane.b32.xlu1 %v339_v57, %s519_s26 }
 0x33c   :  { %v345_v60 = vsub.f32 %v400_v55, %v344_v59 }
 0x33e   :  { %354 = vrot.lane.b32.xlu1 %v345_v60, %s520_s27 }
 0x3ac   :  { %v349_v61 = vpop.permute.xlu1 %348 }
 0x3ad   :  { %352 = vst.msk [vmem:[#allocation2] sm:$0xff] %vm351_vm3, %v349_v61 }
 0x3b0   :  { %v355_v62 = vpop.permute.xlu1 %354 }
 0x3b1   :  { %358 = vst.msk [vmem:[#allocation2] sm:$0xff] %vm357_vm4, %v355_v62 }
 0x3b2   :  { %360 = vst.msk [vmem:[#allocation2] sm:$0xff] %vm359_vm5, %v310_v42 }
 0x3b3   :  { %362 = vst.msk [vmem:[#allocation2] sm:$0xff] %vm361_vm6, %v517_v1 }
 0x3b4   :  { %504 = shalt.err (!%p501_p4)
}
 0x3b5   :  { %s505_s9 = scalar_lea.hbm %s686_s8, 128 }
 0x3b6   :  { %p506_p5 = scmp.ne.s32.totalorder %s686_s8, %s505_s9  ;;  %p509_p6 = scmp.lt.u32.totalorder %s505_s9, %s686_s8 }
 0x3b8   :  { %p511_p7 = pnand %p509_p6, %p506_p5 }
 0x3ba   :  { %514 = shalt.err (!%p511_p7)
}
 0x3bb   :  { %372 = dma.vmem_to_hbm [thread:$0]  %s370_s4, 128, %s686_s8, [#allocation3]  }
 0x3bc   :  { %515 = dma.done.wait [#allocation3], 128  }
 0x3bd   :  { %516 = vsyncadd [#allocation3], 4294967168 }
 0x3be   :  { %376 = vsyncpa [#allocation3], 1 }

</bundles_post_ra>
